<compile_context>
chip_gen: v6e
topology: v6e:2x2x1
jax: 0.10.0
libtpu: 0.0.40
codegen_flags: <defaults>
</compile_context>

<pallas_src>
import functools

import jax
import jax.numpy as jnp
from jax.experimental import pallas as pl
from jax.experimental.pallas import tpu as pltpu

LANE = 128                     # TPU lane width: pad every layer width to this.
IN_FEATURES = 28 * 28
SIZES = (IN_FEATURES, 70, 55, 28, 10)   # fc1..fc4 (in, h1, h2, h3, out)


# ---------------------------------------------------------------------------
# Pallas kernel: the whole MLP, fused
# ---------------------------------------------------------------------------
def _mlp_kernel(x_ref, w1_ref, b1_ref, w2_ref, b2_ref,
                w3_ref, b3_ref, w4_ref, b4_ref, o_ref):
    """o = ReLU(ReLU(ReLU(x@W1+b1)@W2+b2)@W3+b3)@W4+b4 for one M-tile."""
    # f32 input tile is cast to bf16 in-kernel (rides free VPU slack); all MXU
    # inputs are bf16 with f32 accumulation; bias/ReLU epilogue stays f32
    # (v5e has no bf16 VPU).
    x = x_ref[...].astype(jnp.bfloat16)
    h = jnp.dot(x, w1_ref[...], preferred_element_type=jnp.float32)
    h = jnp.maximum(h + b1_ref[...], 0.0)
    h = jnp.dot(h.astype(jnp.bfloat16), w2_ref[...],
                preferred_element_type=jnp.float32)
    h = jnp.maximum(h + b2_ref[...], 0.0)
    h = jnp.dot(h.astype(jnp.bfloat16), w3_ref[...],
                preferred_element_type=jnp.float32)
    h = jnp.maximum(h + b3_ref[...], 0.0)
    h = jnp.dot(h.astype(jnp.bfloat16), w4_ref[...],
                preferred_element_type=jnp.float32)
    # Lane-dense 128-wide bf16 store (halves writeback bytes; no masked vst).
    o_ref[...] = (h + b4_ref[...]).astype(o_ref.dtype)


# ---------------------------------------------------------------------------
# Parameter prep (ONCE at model-load time, outside the jitted forward):
# PyTorch (out, in) Linear weights -> padded bf16 GEMM weights + f32 biases.
# ---------------------------------------------------------------------------
def _pad2(a, rows, cols):
    return jnp.pad(a, ((0, rows - a.shape[0]), (0, cols - a.shape[1])))


def prepare_params(params):
    prepared = []
    for idx, (k, n) in enumerate(zip(SIZES[:-1], SIZES[1:]), start=1):
        w = params[f"fc{idx}_w"]                 # (n, k) PyTorch layout
        b = params[f"fc{idx}_b"]                 # (n,)
        k_pad = k if idx == 1 else LANE          # fc2..fc4 inputs are lane-padded
        wp = _pad2(w.T.astype(jnp.float32), k_pad, LANE).astype(jnp.bfloat16)
        bp = jnp.pad(b.astype(jnp.float32), (0, LANE - n)).reshape(1, LANE)
        prepared += [wp, bp]                     # zero pad => padded lanes stay 0
    return tuple(jax.device_put(p) for p in prepared)


# ---------------------------------------------------------------------------
# Forward pass
# ---------------------------------------------------------------------------
@functools.partial(jax.jit, static_argnames=("tile_m",))
def custom_mlp_forward(prepared, img, *, tile_m=1024):
    b = img.shape[0]
    x = img.reshape(b, -1).astype(jnp.float32)
    assert x.shape[1] == IN_FEATURES

    # M tile selection:
    #  * 16-aligned (bf16 output native (16,128) tiling),
    #  * at most tile_m (sweepable),
    #  * grid >= 2 steps whenever the batch allows, so the "parallel" axis can
    #    shard across both TensorCores on v7x megacore parts.
    m_rounded = max(16, pl.cdiv(b, 16) * 16)
    tm = min(tile_m, m_rounded)
    if tm == m_rounded and m_rounded >= 32:      # single tile but splittable
        tm = max(16, (m_rounded // 2) // 16 * 16)
    m_pad = pl.cdiv(b, tm) * tm
    if m_pad != b:
        x = jnp.pad(x, ((0, m_pad - b), (0, 0)))

    w1, b1, w2, b2, w3, b3, w4, b4 = prepared

    def resident(arr):
        # Same block index every grid step => weights stay VMEM-resident.
        return pl.BlockSpec(arr.shape, lambda i: (0, 0))

    out = pl.pallas_call(
        _mlp_kernel,
        out_shape=jax.ShapeDtypeStruct((m_pad, LANE), jnp.bfloat16),
        grid_spec=pltpu.PrefetchScalarGridSpec(
            num_scalar_prefetch=0,
            grid=(m_pad // tm,),
            in_specs=[pl.BlockSpec((tm, IN_FEATURES), lambda i: (i, 0)),
                      resident(w1), resident(b1),
                      resident(w2), resident(b2),
                      resident(w3), resident(b3),
                      resident(w4), resident(b4)],
            out_specs=pl.BlockSpec((tm, LANE), lambda i: (i, 0)),
        ),
        compiler_params=pltpu.CompilerParams(
            dimension_semantics=("parallel",)),
    )(x, w1, b1, w2, b2, w3, b3, w4, b4)

    # Drop batch padding and zero-padded lanes (10 real classes); return f32
    # logits (tiny b x 10 cast) to preserve the original module's output dtype.
    return out[:b, :SIZES[-1]].astype(jnp.float32)


# ---------------------------------------------------------------------------
# Reference + init
# ---------------------------------------------------------------------------
def custom_mlp_reference(params, img):
    x = img.reshape(img.shape[0], -1).astype(jnp.float32)
    for idx in range(1, 4):
        x = jnp.maximum(x @ params[f"fc{idx}_w"].T + params[f"fc{idx}_b"], 0.0)
    return x @ params["fc4_w"].T + params["fc4_b"]


def init_params(key):
    ks = jax.random.split(key, 2 * (len(SIZES) - 1))
    params = {}
    for idx, (fan_in, fan_out) in enumerate(zip(SIZES[:-1], SIZES[1:]), start=1):
        bound = fan_in ** -0.5                   # PyTorch nn.Linear default init
        params[f"fc{idx}_w"] = jax.random.uniform(
            ks[2 * idx - 2], (fan_out, fan_in), jnp.float32, -bound, bound)
        params[f"fc{idx}_b"] = jax.random.uniform(
            ks[2 * idx - 1], (fan_out,), jnp.float32, -bound, bound)
    return params


if __name__ == "__main__":
    key = jax.random.PRNGKey(0)
    k_img, k_p = jax.random.split(key)
    img = jax.random.normal(k_img, (2, 1, 28, 28), jnp.float32)
    params = init_params(k_p)
    prepared = prepare_params(params)            # once, at model-load time

    out = jax.block_until_ready(custom_mlp_forward(prepared, img))
    assert out.shape == (2, 10) and out.dtype == jnp.float32

    ref = custom_mlp_reference(params, img)
    # bf16 MXU inputs + bf16 output store with f32 accumulation:
    # ~1% relative error expected, well within tolerance.
    assert jnp.allclose(out, ref, rtol=5e-2, atol=5e-2), \
        float(jnp.max(jnp.abs(out - ref)))
    print("KERNEL_OK")
</pallas_src>

<mosaic_0001>
module attributes {stable_mosaic.version = 11 : i64} {
  func.func @_mlp_kernel(%arg0: i32, %arg1: memref<16x784xf32, #tpu.memory_space<vmem>>, %arg2: memref<784x128xbf16, #tpu.memory_space<vmem>>, %arg3: memref<1x128xf32, #tpu.memory_space<vmem>>, %arg4: memref<128x128xbf16, #tpu.memory_space<vmem>>, %arg5: memref<1x128xf32, #tpu.memory_space<vmem>>, %arg6: memref<128x128xbf16, #tpu.memory_space<vmem>>, %arg7: memref<1x128xf32, #tpu.memory_space<vmem>>, %arg8: memref<128x128xbf16, #tpu.memory_space<vmem>>, %arg9: memref<1x128xf32, #tpu.memory_space<vmem>>, %arg10: memref<16x128xbf16, #tpu.memory_space<vmem>>) attributes {dimension_semantics = [#tpu.dimension_semantics<parallel>], iteration_bounds = array<i64: 1>, scalar_prefetch = 0 : i64, scratch_operands = 0 : i64, tpu.core_type = #tpu.core_type<tc>, window_params = [{transform_indices = @transform_0, window_bounds = array<i64: 16, 784>}, {pipeline_mode = #tpu.pipeline_mode<synchronous>, transform_indices = @transform_1, window_bounds = array<i64: 784, 128>}, {pipeline_mode = #tpu.pipeline_mode<synchronous>, transform_indices = @transform_2, window_bounds = array<i64: 1, 128>}, {pipeline_mode = #tpu.pipeline_mode<synchronous>, transform_indices = @transform_3, window_bounds = array<i64: 128, 128>}, {pipeline_mode = #tpu.pipeline_mode<synchronous>, transform_indices = @transform_4, window_bounds = array<i64: 1, 128>}, {pipeline_mode = #tpu.pipeline_mode<synchronous>, transform_indices = @transform_5, window_bounds = array<i64: 128, 128>}, {pipeline_mode = #tpu.pipeline_mode<synchronous>, transform_indices = @transform_6, window_bounds = array<i64: 1, 128>}, {pipeline_mode = #tpu.pipeline_mode<synchronous>, transform_indices = @transform_7, window_bounds = array<i64: 128, 128>}, {pipeline_mode = #tpu.pipeline_mode<synchronous>, transform_indices = @transform_8, window_bounds = array<i64: 1, 128>}, {transform_indices = @transform_9, window_bounds = array<i64: 16, 128>}]} {
    %c0 = arith.constant 0 : index
    %c0_0 = arith.constant 0 : index
    %0 = vector.load %arg1[%c0, %c0_0] : memref<16x784xf32, #tpu.memory_space<vmem>>, vector<16x784xf32>
    %1 = arith.truncf %0 : vector<16x784xf32> to vector<16x784xbf16>
    %c0_1 = arith.constant 0 : index
    %c0_2 = arith.constant 0 : index
    %2 = vector.load %arg2[%c0_1, %c0_2] : memref<784x128xbf16, #tpu.memory_space<vmem>>, vector<784x128xbf16>
    %cst = arith.constant dense<0.000000e+00> : vector<16x128xf32>
    %3 = tpu.matmul %1, %2, %cst {dimension_numbers = #tpu.dot_dimension_numbers<[1], [0], [0], [1], [0, 0, 1, 1], [], []>} : vector<16x784xbf16>, vector<784x128xbf16>, vector<16x128xf32> -> vector<16x128xf32>
    %c0_3 = arith.constant 0 : index
    %c0_4 = arith.constant 0 : index
    %4 = vector.load %arg3[%c0_3, %c0_4] : memref<1x128xf32, #tpu.memory_space<vmem>>, vector<1x128xf32>
    %5 = vector.broadcast %4 : vector<1x128xf32> to vector<16x128xf32>
    %6 = arith.addf %3, %5 : vector<16x128xf32>
    %cst_5 = arith.constant 0.000000e+00 : f32
    %7 = vector.broadcast %cst_5 : f32 to vector<16x128xf32>
    %8 = arith.maximumf %6, %7 : vector<16x128xf32>
    %9 = arith.truncf %8 : vector<16x128xf32> to vector<16x128xbf16>
    %c0_6 = arith.constant 0 : index
    %c0_7 = arith.constant 0 : index
    %10 = vector.load %arg4[%c0_6, %c0_7] : memref<128x128xbf16, #tpu.memory_space<vmem>>, vector<128x128xbf16>
    %cst_8 = arith.constant dense<0.000000e+00> : vector<16x128xf32>
    %11 = tpu.matmul %9, %10, %cst_8 {dimension_numbers = #tpu.dot_dimension_numbers<[1], [0], [0], [1], [0, 0, 1, 1], [], []>} : vector<16x128xbf16>, vector<128x128xbf16>, vector<16x128xf32> -> vector<16x128xf32>
    %c0_9 = arith.constant 0 : index
    %c0_10 = arith.constant 0 : index
    %12 = vector.load %arg5[%c0_9, %c0_10] : memref<1x128xf32, #tpu.memory_space<vmem>>, vector<1x128xf32>
    %13 = vector.broadcast %12 : vector<1x128xf32> to vector<16x128xf32>
    %14 = arith.addf %11, %13 : vector<16x128xf32>
    %cst_11 = arith.constant 0.000000e+00 : f32
    %15 = vector.broadcast %cst_11 : f32 to vector<16x128xf32>
    %16 = arith.maximumf %14, %15 : vector<16x128xf32>
    %17 = arith.truncf %16 : vector<16x128xf32> to vector<16x128xbf16>
    %c0_12 = arith.constant 0 : index
    %c0_13 = arith.constant 0 : index
    %18 = vector.load %arg6[%c0_12, %c0_13] : memref<128x128xbf16, #tpu.memory_space<vmem>>, vector<128x128xbf16>
    %cst_14 = arith.constant dense<0.000000e+00> : vector<16x128xf32>
    %19 = tpu.matmul %17, %18, %cst_14 {dimension_numbers = #tpu.dot_dimension_numbers<[1], [0], [0], [1], [0, 0, 1, 1], [], []>} : vector<16x128xbf16>, vector<128x128xbf16>, vector<16x128xf32> -> vector<16x128xf32>
    %c0_15 = arith.constant 0 : index
    %c0_16 = arith.constant 0 : index
    %20 = vector.load %arg7[%c0_15, %c0_16] : memref<1x128xf32, #tpu.memory_space<vmem>>, vector<1x128xf32>
    %21 = vector.broadcast %20 : vector<1x128xf32> to vector<16x128xf32>
    %22 = arith.addf %19, %21 : vector<16x128xf32>
    %cst_17 = arith.constant 0.000000e+00 : f32
    %23 = vector.broadcast %cst_17 : f32 to vector<16x128xf32>
    %24 = arith.maximumf %22, %23 : vector<16x128xf32>
    %25 = arith.truncf %24 : vector<16x128xf32> to vector<16x128xbf16>
    %c0_18 = arith.constant 0 : index
    %c0_19 = arith.constant 0 : index
    %26 = vector.load %arg8[%c0_18, %c0_19] : memref<128x128xbf16, #tpu.memory_space<vmem>>, vector<128x128xbf16>
    %cst_20 = arith.constant dense<0.000000e+00> : vector<16x128xf32>
    %27 = tpu.matmul %25, %26, %cst_20 {dimension_numbers = #tpu.dot_dimension_numbers<[1], [0], [0], [1], [0, 0, 1, 1], [], []>} : vector<16x128xbf16>, vector<128x128xbf16>, vector<16x128xf32> -> vector<16x128xf32>
    %c0_21 = arith.constant 0 : index
    %c0_22 = arith.constant 0 : index
    %28 = vector.load %arg9[%c0_21, %c0_22] : memref<1x128xf32, #tpu.memory_space<vmem>>, vector<1x128xf32>
    %29 = vector.broadcast %28 : vector<1x128xf32> to vector<16x128xf32>
    %30 = arith.addf %27, %29 : vector<16x128xf32>
    %31 = arith.truncf %30 : vector<16x128xf32> to vector<16x128xbf16>
    %c0_23 = arith.constant 0 : index
    %c0_24 = arith.constant 0 : index
    %32 = vector.load %arg10[%c0_23, %c0_24] : memref<16x128xbf16, #tpu.memory_space<vmem>>, vector<16x128xbf16>
    tpu.vector_store %arg10[%c0_23, %c0_24], %31 {strides = array<i32>} : memref<16x128xbf16, #tpu.memory_space<vmem>>, vector<16x128xbf16>,
    return
  }
  func.func @transform_0(%arg0: i32) -> (i32, i32) {
    %c0_i32 = arith.constant 0 : i32
    %c0_i32_0 = arith.constant 0 : i32
    return %arg0, %c0_i32 : i32, i32
  }
  func.func @transform_1(%arg0: i32) -> (i32, i32) {
    %c0_i32 = arith.constant 0 : i32
    %c0_i32_0 = arith.constant 0 : i32
    %c0_i32_1 = arith.constant 0 : i32
    return %c0_i32, %c0_i32_0 : i32, i32
  }
  func.func @transform_2(%arg0: i32) -> (i32, i32) {
    %c0_i32 = arith.constant 0 : i32
    %c0_i32_0 = arith.constant 0 : i32
    %c0_i32_1 = arith.constant 0 : i32
    return %c0_i32, %c0_i32_0 : i32, i32
  }
  func.func @transform_3(%arg0: i32) -> (i32, i32) {
    %c0_i32 = arith.constant 0 : i32
    %c0_i32_0 = arith.constant 0 : i32
    %c0_i32_1 = arith.constant 0 : i32
    return %c0_i32, %c0_i32_0 : i32, i32
  }
  func.func @transform_4(%arg0: i32) -> (i32, i32) {
    %c0_i32 = arith.constant 0 : i32
    %c0_i32_0 = arith.constant 0 : i32
    %c0_i32_1 = arith.constant 0 : i32
    return %c0_i32, %c0_i32_0 : i32, i32
  }
  func.func @transform_5(%arg0: i32) -> (i32, i32) {
    %c0_i32 = arith.constant 0 : i32
    %c0_i32_0 = arith.constant 0 : i32
    %c0_i32_1 = arith.constant 0 : i32
    return %c0_i32, %c0_i32_0 : i32, i32
  }
  func.func @transform_6(%arg0: i32) -> (i32, i32) {
    %c0_i32 = arith.constant 0 : i32
    %c0_i32_0 = arith.constant 0 : i32
    %c0_i32_1 = arith.constant 0 : i32
    return %c0_i32, %c0_i32_0 : i32, i32
  }
  func.func @transform_7(%arg0: i32) -> (i32, i32) {
    %c0_i32 = arith.constant 0 : i32
    %c0_i32_0 = arith.constant 0 : i32
    %c0_i32_1 = arith.constant 0 : i32
    return %c0_i32, %c0_i32_0 : i32, i32
  }
  func.func @transform_8(%arg0: i32) -> (i32, i32) {
    %c0_i32 = arith.constant 0 : i32
    %c0_i32_0 = arith.constant 0 : i32
    %c0_i32_1 = arith.constant 0 : i32
    return %c0_i32, %c0_i32_0 : i32, i32
  }
  func.func @transform_9(%arg0: i32) -> (i32, i32) {
    %c0_i32 = arith.constant 0 : i32
    %c0_i32_0 = arith.constant 0 : i32
    return %arg0, %c0_i32 : i32, i32
  }
}

</mosaic_0001>

<bundles_post_ra>
// kernel: custom_mlp_forward.1
= control target key start
LH: loop header
LB: loop body
LE: loop exit
PB: predicated region body
PF: predicated region fallthrough
CT: control target
= control target key end

     0   :  { %14 = vsyncpa [#allocation3], 0  ;;  %s1343_s30 = smov [#allocation2]   ;;  %s1563_s0 = inlined_call_operand.vmem [shape: f32[16,784], index: 0, kind: input, shape index: {}]   ;;  %s1564_s1 = inlined_call_operand.hbm [shape: bf16[784,128], index: 1, kind: input, shape index: {}]   ;;  %s1565_s2 = inlined_call_operand.vmem [shape: f32[1,128], index: 2, kind: input, shape index: {}]   ;;  %s1566_s3 = inlined_call_operand.vmem [shape: bf16[128,128], index: 3, kind: input, shape index: {}]   ;;  %s1567_s4 = inlined_call_operand.vmem [shape: f32[1,128], index: 4, kind: input, shape index: {}]   ;;  %s1568_s5 = inlined_call_operand.vmem [shape: bf16[128,128], index: 5, kind: input, shape index: {}]   ;;  %s1569_s6 = inlined_call_operand.vmem [shape: f32[1,128], index: 6, kind: input, shape index: {}]   ;;  %s1570_s7 = inlined_call_operand.vmem [shape: bf16[128,128], index: 7, kind: input, shape index: {}]   ;;  %s1571_s8 = inlined_call_operand.vmem [shape: f32[1,128], index: 8, kind: input, shape index: {}]   ;;  %s1572_s9 = inlined_call_operand.vmem [shape: bf16[16,128], index: 9, kind: output, shape index: {}]  }
   0x1   :  { %s22_s10 = sshll.u32 %s1343_s30, 4  ;;  %s23_s10 = int_to_ptr.vmem [resolvable:$true] %s22_s10 }
   0x2   :  { %s1329_s11 = scalar_lea.vmem %s23_s10, 6272  ;;  %p1334_p1 = scmp.lt.s32.totalorder %s23_s10, %s23_s10 }
   0x3   :  { %p1330_p0 = scmp.ne.s32.totalorder %s23_s10, %s1329_s11  ;;  %p1335_p2 = scmp.lt.s32.totalorder %s1329_s11, %s1329_s11 }
   0x5   :  { %p1336_p3 = por %p1335_p2, %p1334_p1 }
   0x7   :  { %p1337_p4 = pnand %p1336_p3, %p1330_p0 }
   0x9   :  { %1340 = shalt.err (!%p1337_p4)
}
   0xa   :  { %s1344_s12 = smov 64   ;;  %s1345_s13 = smov 4  }
   0xb   :  { %28 = dma.hbm_to_vmem [thread:$0]  %s1564_s1, 6272, %s23_s10, [#allocation3], %s1344_s12, %s1344_s12, %s1345_s13  }
   0xc   :  { %1341 = dma.done.wait [#allocation3], 6272  }
   0xd   :  { %1342 = vsyncadd [#allocation3], 4294961024  ;;  %v1248_v0 = vld [vmem:[#allocation2 + $0x78] sm:$0xff]   ;;  %v1252_v4 = vld [vmem:[#allocation2 + $0x70] sm:$0xff]   ;;  %v1346_v43 = vmov 0.0   ;;  %vm1347_vm0 = vmmov 0  }
   0xe   :  { %v1249_v1 = vld [vmem:[#allocation2 + $0x38] sm:$0xff]   ;;  %1082 = vmatprep.subr.bf16.mxu0 %v1248_v0  ;;  %v1253_v5 = vld [vmem:[#allocation2 + $0x30] sm:$0xff]   ;;  %v1256_v8 = vld [vmem:[#allocation2 + $0x68] sm:$0xff]   ;;  %vm467_vm1 = vcmask 130048  }
   0xf   :  { %v1250_v2 = vld [vmem:[#allocation2 + $0xf8] sm:$0xff]   ;;  %1083 = vmatpush3.bf16.msra.mxu0 %v1249_v1  ;;  %v1254_v6 = vld [vmem:[#allocation2 + $0xf0] sm:$0xff]   ;;  %v1257_v9 = vld [vmem:[#allocation2 + $0x28] sm:$0xff]  }
  0x10   :  { %v1251_v3 = vld [vmem:[#allocation2 + $0xb8] sm:$0xff]   ;;  %1104 = vmatprep.subr.bf16.mxu1 %v1250_v2  ;;  %1084 = vmatprep.subr.bf16.mxu0 %v1252_v4  ;;  %v1255_v7 = vld [vmem:[#allocation2 + $0xb0] sm:$0xff]   ;;  %v1258_v10 = vld [vmem:[#allocation2 + $0xe8] sm:$0xff]  }
  0x11   :  { %1105 = vmatpush3.bf16.msra.mxu1 %v1251_v3  ;;  %v1259_v11 = vld [vmem:[#allocation2 + $0xa8] sm:$0xff]   ;;  %v1260_v12 = vld [vmem:[#allocation2 + $0x60] sm:$0xff]   ;;  %v1264_v16 = vld [vmem:[#allocation2 + $0x58] sm:$0xff]  }
  0x12   :  { %1106 = vmatprep.subr.bf16.mxu1 %v1254_v6  ;;  %v1261_v13 = vld [vmem:[#allocation2 + $0x20] sm:$0xff]   ;;  %v1265_v17 = vld [vmem:[#allocation2 + $0x18] sm:$0xff]   ;;  %v1268_v20 = vld [vmem:[#allocation2 + $0x50] sm:$0xff]  }
  0x13   :  { %1085 = vmatpush3.bf16.msra.mxu0 %v1253_v5  ;;  %v1262_v14 = vld [vmem:[#allocation2 + $0xe0] sm:$0xff]   ;;  %v1266_v18 = vld [vmem:[#allocation2 + $0xd8] sm:$0xff]   ;;  %v1269_v21 = vld [vmem:[#allocation2 + $0x10] sm:$0xff]  }
  0x14   :  { %1086 = vmatprep.subr.bf16.mxu0 %v1256_v8  ;;  %v1263_v15 = vld [vmem:[#allocation2 + $0xa0] sm:$0xff]   ;;  %v1267_v19 = vld [vmem:[#allocation2 + $0x98] sm:$0xff]   ;;  %v1270_v22 = vld [vmem:[#allocation2 + $0xd0] sm:$0xff]  }
  0x15   :  { %1107 = vmatpush3.bf16.msra.mxu1 %v1255_v7  ;;  %v1271_v23 = vld [vmem:[#allocation2 + $0x90] sm:$0xff]   ;;  %v1272_v24 = vld [vmem:[#allocation2 + $0x48] sm:$0xff]   ;;  %v1276_v28 = vld [vmem:[#allocation2 + $0x40] sm:$0xff]  }
  0x16   :  { %1108 = vmatprep.subr.bf16.mxu1 %v1258_v10  ;;  %v1273_v25 = vld [vmem:[#allocation2 + $0x8] sm:$0xff]   ;;  %v1277_v29 = vld [vmem:[#allocation2] sm:$0xff]   ;;  %v54_v36 = vld [vmem:[%s1563_s0 + $0x38] sm:$0xff] }
  0x17   :  { %1087 = vmatpush3.bf16.msra.mxu0 %v1257_v9  ;;  %v1274_v26 = vld [vmem:[#allocation2 + $0xc8] sm:$0xff]   ;;  %v1278_v30 = vld [vmem:[#allocation2 + $0xc0] sm:$0xff]   ;;  %v1280_v38 = vld [vmem:[#allocation2 + $0x178] sm:$0xff]  }
  0x18   :  { %1088 = vmatprep.subr.bf16.mxu0 %v1260_v12  ;;  %v1275_v27 = vld [vmem:[#allocation2 + $0x88] sm:$0xff]   ;;  %v55_v32 = vld [vmem:[%s1563_s0 + $0x40] sm:$0xff]  ;;  %v50_v39 = vld [vmem:[%s1563_s0 + $0x18] sm:$0xff] }
  0x19   :  { %1109 = vmatpush3.bf16.msra.mxu1 %v1259_v11  ;;  %v48_v31 = vld [vmem:[%s1563_s0 + $0x8] sm:$0xff]  ;;  %v1279_v34 = vld [vmem:[#allocation2 + $0x80] sm:$0xff]   ;;  %v57_v40 = vld [vmem:[%s1563_s0 + $0x50] sm:$0xff] }
  0x1a   :  { %1110 = vmatprep.subr.bf16.mxu1 %v1262_v14  ;;  %v62_v33 = vpack.c.bf16 %v55_v32, %v48_v31  ;;  %v47_v35 = vld [vmem:[%s1563_s0] sm:$0xff]  ;;  %v64_v41 = vpack.c.bf16 %v57_v40, %v50_v39  ;;  %v1281_v42 = vld [vmem:[#allocation2 + $0x138] sm:$0xff]   ;;  %v49_v44 = vld [vmem:[%s1563_s0 + $0x10] sm:$0xff] }
  0x1b   :  { %1089 = vmatpush3.bf16.msra.mxu0 %v1261_v13  ;;  %v61_v37 = vpack.c.bf16 %v54_v36, %v47_v35  ;;  %v56_v45 = vld [vmem:[%s1563_s0 + $0x48] sm:$0xff]  ;;  %v1282_v47 = vld [vmem:[#allocation2 + $0x170] sm:$0xff]   ;;  %v1286_v51 = vld [vmem:[#allocation2 + $0x160] sm:$0xff]  }
  0x1c   :  { %1090 = vmatprep.subr.bf16.mxu0 %v1264_v16  ;;  %503 = vmatprep.mubr.bf16.mxu0 %v62_v33  ;;  %v63_v46 = vpack.c.bf16 %v56_v45, %v49_v44  ;;  %v1283_v48 = vld [vmem:[#allocation2 + $0x130] sm:$0xff]   ;;  %v1284_v49 = vld [vmem:[#allocation2 + $0x168] sm:$0xff]   ;;  %v1287_v52 = vld [vmem:[#allocation2 + $0x120] sm:$0xff]  }
  0x1d   :  { %1111 = vmatpush3.bf16.msra.mxu1 %v1263_v15  ;;  %544 = vmatprep.mubr.bf16.mxu1 %v64_v41  ;;  %v1285_v50 = vld [vmem:[#allocation2 + $0x128] sm:$0xff]   ;;  %v1288_v53 = vld [vmem:[#allocation2 + $0x158] sm:$0xff]   ;;  %v1290_v55 = vld [vmem:[#allocation2 + $0x150] sm:$0xff]  }
  0x1e   :  { %1112 = vmatprep.subr.bf16.mxu1 %v1266_v18  ;;  %v1289_v54 = vld [vmem:[#allocation2 + $0x118] sm:$0xff]   ;;  %v1296_v56 = vld [vmem:[#allocation2 + $0x180] sm:$0xff]   ;;  %v52_v57 = vld [vmem:[%s1563_s0 + $0x28] sm:$0xff] }
  0x1f   :  { %1091 = vmatpush3.bf16.msra.mxu0 %v1265_v17  ;;  %v1291_v58 = vld [vmem:[#allocation2 + $0x110] sm:$0xff]   ;;  %v1292_v59 = vld [vmem:[#allocation2 + $0x148] sm:$0xff]   ;;  %v59_v60 = vld [vmem:[%s1563_s0 + $0x60] sm:$0xff] }
  0x20   :  { %1092 = vmatprep.subr.bf16.mxu0 %v1268_v20  ;;  %v66_v61 = vpack.c.bf16 %v59_v60, %v52_v57  ;;  %v53_v62 = vld [vmem:[%s1563_s0 + $0x30] sm:$0xff]  ;;  %v60_v63 = vld [vmem:[%s1563_s0 + $0x68] sm:$0xff]  ;;  %v1294_v2 = vld [vmem:[#allocation2 + $0x140] sm:$0xff]  }
  0x21   :  { %1113 = vmatpush3.bf16.msra.mxu1 %v1267_v19  ;;  %v67_v0 = vpack.c.bf16 %v60_v63, %v53_v62  ;;  %v1293_v1 = vld [vmem:[#allocation2 + $0x108] sm:$0xff]   ;;  %v1295_v3 = vld [vmem:[#allocation2 + $0x100] sm:$0xff]   ;;  %v58_v5 = vld [vmem:[%s1563_s0 + $0x58] sm:$0xff] }
  0x22   :  { %1114 = vmatprep.subr.bf16.mxu1 %v1270_v22  ;;  %v51_v4 = vld [vmem:[%s1563_s0 + $0x20] sm:$0xff]  ;;  %v1297_v7 = vld [vmem:[%s1566_s3 + $0x38] sm:$0xff]   ;;  %v1298_v8 = vld [vmem:[%s1566_s3 + $0x30] sm:$0xff]  }
  0x23   :  { %1093 = vmatpush3.bf16.msra.mxu0 %v1269_v21  ;;  %v65_v6 = vpack.c.bf16 %v58_v5, %v51_v4  ;;  %v1299_v9 = vld [vmem:[%s1566_s3 + $0x28] sm:$0xff]   ;;  %v1300_v10 = vld [vmem:[%s1566_s3 + $0x20] sm:$0xff]   ;;  %v1301_v11 = vld [vmem:[%s1566_s3 + $0x18] sm:$0xff]  }
  0x24   :  { %1094 = vmatprep.subr.bf16.mxu0 %v1272_v24  ;;  %v1302_v12 = vld [vmem:[%s1566_s3 + $0x10] sm:$0xff]   ;;  %v1303_v13 = vld [vmem:[%s1566_s3 + $0x8] sm:$0xff]   ;;  %v1304_v14 = vld [vmem:[%s1566_s3] sm:$0xff]  }
  0x25   :  { %1115 = vmatpush3.bf16.msra.mxu1 %v1271_v23  ;;  %v1305_v15 = vld [vmem:[%s1568_s5 + $0x38] sm:$0xff]   ;;  %v1306_v16 = vld [vmem:[%s1568_s5 + $0x30] sm:$0xff]   ;;  %v1307_v17 = vld [vmem:[%s1568_s5 + $0x28] sm:$0xff]  }
  0x26   :  { %1116 = vmatprep.subr.bf16.mxu1 %v1274_v26  ;;  %v1308_v18 = vld [vmem:[%s1568_s5 + $0x20] sm:$0xff]   ;;  %v1309_v19 = vld [vmem:[%s1568_s5 + $0x18] sm:$0xff]   ;;  %v1315_v60 = vld [vmem:[%s1570_s7 + $0x28] sm:$0xff]  }
  0x27   :  { %1095 = vmatpush3.bf16.msra.mxu0 %v1273_v25  ;;  %v995_v32 = vld [vmem:[%s1565_s2] ss:$0 sm:$0xff]  ;;  %v1317_v62 = vld [vmem:[%s1570_s7 + $0x18] sm:$0xff]  }
  0x28   :  { %1096 = vmatprep.subr.bf16.mxu0 %v1276_v28  ;;  %v1312_v57 = vld [vmem:[%s1568_s5] sm:$0xff]  }
  0x29   :  { %1117 = vmatpush3.bf16.msra.mxu1 %v1275_v27  ;;  %v1046_v63 = vld [vmem:[%s1567_s4] ss:$0 sm:$0xff] }
  0x2a   :  { %1118 = vmatprep.subr.bf16.mxu1 %v1278_v30 }
  0x2b   :  { %1097 = vmatpush3.bf16.msra.mxu0 %v1277_v29 }
  0x2c   :  { %1126 = vmatprep.subr.bf16.mxu0 %v1280_v38 }
  0x2d   :  { %1119 = vmatpush3.bf16.msra.mxu1 %v1279_v34 }
  0x2e   :  { %1177 = vmatprep.subr.bf16.mxu1 %v1346_v43  ;;  %504 = vmatmul.mubr.bf16.vlgmr.msra.gmra.mxu0 %v61_v37 }
  0x2f   :  { %1127 = vmatpush3.bf16.msra.mxu0 %v1281_v42  ;;  %585 = vmatprep.mubr.bf16.mxu0 %v66_v61  ;;  %v1316_v61 = vld [vmem:[%s1570_s7 + $0x20] sm:$0xff]  }
  0x30   :  { %545 = vmatmul.mubr.bf16.vlgmr.msra.gmra.mxu1 %v63_v46  ;;  %1128 = vmatprep.subr.bf16.mxu0 %v1282_v47 }
  0x31   :  { %1179 = vmatprep.mubr.msk.bf16.mxu1 %vm1347_vm0, %v1346_v43  ;;  %1178 = vmatpush3.bf16.msra.mxu1 %v1296_v56  ;;  %v1311_v56 = vld [vmem:[%s1568_s5 + $0x8] sm:$0xff]  }
  0x32   :  { %1183 = vmatprep.subr.bf16.mxu1 %v1346_v43 }
  0x33   :  { %1129 = vmatpush3.bf16.msra.mxu0 %v1283_v48 }
  0x34   :  { %1130 = vmatprep.subr.bf16.mxu0 %v1284_v49 }
  0x37   :  { %1131 = vmatpush3.bf16.msra.mxu0 %v1285_v50 }
  0x38   :  { %1132 = vmatprep.subr.bf16.mxu0 %v1286_v51  ;;  %1180 = vmatmul.mubr.msk.bf16.vlgmr.msra.gmra.mxu1 %vm467_vm1, %v67_v0 }
  0x39   :  { %1199 = vmatprep.mubr.msk.bf16.mxu1 %vm1347_vm0, %v1346_v43  ;;  %1184 = vmatpush3.bf16.msra.mxu1 %v1297_v7 }
  0x3a   :  { %1185 = vmatprep.subr.bf16.mxu1 %v1346_v43 }
  0x3b   :  { %1133 = vmatpush3.bf16.msra.mxu0 %v1287_v52 }
  0x3c   :  { %1134 = vmatprep.subr.bf16.mxu0 %v1288_v53 }
  0x3d   :  { %1186 = vmatpush3.bf16.msra.mxu1 %v1298_v8 }
  0x3e   :  { %1187 = vmatprep.subr.bf16.mxu1 %v1346_v43 }
  0x3f   :  { %1135 = vmatpush3.bf16.msra.mxu0 %v1289_v54 }
  0x40   :  { %1136 = vmatprep.subr.bf16.mxu0 %v1290_v55  ;;  %v1310_v55 = vld [vmem:[%s1568_s5 + $0x10] sm:$0xff]  }
  0x41   :  { %1188 = vmatpush3.bf16.msra.mxu1 %v1299_v9  ;;  %v1318_v9 = vld [vmem:[%s1570_s7 + $0x10] sm:$0xff]  }
  0x42   :  { %1189 = vmatprep.subr.bf16.mxu1 %v1346_v43 }
  0x43   :  { %1137 = vmatpush3.bf16.msra.mxu0 %v1291_v58  ;;  %v1313_v58 = vld [vmem:[%s1570_s7 + $0x38] sm:$0xff]  }
  0x44   :  { %1138 = vmatprep.subr.bf16.mxu0 %v1292_v59  ;;  %v1314_v59 = vld [vmem:[%s1570_s7 + $0x30] sm:$0xff]  }
  0x45   :  { %1190 = vmatpush3.bf16.msra.mxu1 %v1300_v10  ;;  %v1319_v10 = vld [vmem:[%s1570_s7 + $0x8] sm:$0xff]  }
  0x46   :  { %1191 = vmatprep.subr.bf16.mxu1 %v1346_v43 }
  0x47   :  { %1139 = vmatpush3.bf16.msra.mxu0 %v1293_v1 }
  0x48   :  { %1140 = vmatprep.subr.bf16.mxu0 %v1294_v2 }
  0x49   :  { %1192 = vmatpush3.bf16.msra.mxu1 %v1301_v11  ;;  %v1320_v11 = vld [vmem:[%s1570_s7] sm:$0xff]  }
  0x4a   :  { %1193 = vmatprep.subr.bf16.mxu1 %v1346_v43 }
  0x4b   :  { %1141 = vmatpush3.bf16.msra.mxu0 %v1295_v3 }
  0x4c   :  { %1203 = vmatprep.subr.bf16.mxu0 %v1346_v43 }
  0x4d   :  { %1194 = vmatpush3.bf16.msra.mxu1 %v1302_v12  ;;  %v1055_v12 = vld [vmem:[%s1569_s6] ss:$0 sm:$0xff] }
  0x4e   :  { %586 = vmatmul.mubr.bf16.vlgmr.msra.gmra.mxu0 %v65_v6  ;;  %1195 = vmatprep.subr.bf16.mxu1 %v1346_v43 }
  0x4f   :  { %1219 = vmatprep.mubr.msk.bf16.mxu0 %vm1347_vm0, %v1346_v43  ;;  %1204 = vmatpush3.bf16.msra.mxu0 %v1305_v15 }
  0x50   :  { %1205 = vmatprep.subr.bf16.mxu0 %v1346_v43 }
  0x51   :  { %1196 = vmatpush3.bf16.msra.mxu1 %v1303_v13 }
  0x52   :  { %1197 = vmatprep.subr.bf16.mxu1 %v1346_v43 }
  0x53   :  { %1206 = vmatpush3.bf16.msra.mxu0 %v1306_v16 }
  0x54   :  { %1207 = vmatprep.subr.bf16.mxu0 %v1346_v43 }
  0x55   :  { %1198 = vmatpush3.bf16.msra.mxu1 %v1304_v14 }
  0x56   :  { %1223 = vmatprep.subr.bf16.mxu1 %v1346_v43 }
  0x57   :  { %1208 = vmatpush3.bf16.msra.mxu0 %v1307_v17 }
  0x58   :  { %1209 = vmatprep.subr.bf16.mxu0 %v1346_v43 }
  0x5b   :  { %1210 = vmatpush3.bf16.msra.mxu0 %v1308_v18 }
  0x5c   :  { %1211 = vmatprep.subr.bf16.mxu0 %v1346_v43 }
  0x5f   :  { %1212 = vmatpush3.bf16.msra.mxu0 %v1309_v19 }
  0x60   :  { %1213 = vmatprep.subr.bf16.mxu0 %v1346_v43 }
  0x63   :  { %1214 = vmatpush3.bf16.msra.mxu0 %v1310_v55 }
  0x64   :  { %1215 = vmatprep.subr.bf16.mxu0 %v1346_v43 }
  0x67   :  { %1216 = vmatpush3.bf16.msra.mxu0 %v1311_v56 }
  0x68   :  { %1217 = vmatprep.subr.bf16.mxu0 %v1346_v43 }
  0x6b   :  { %1218 = vmatpush3.bf16.msra.mxu0 %v1312_v57 }
  0xee   :  { %v1098_v23 = vpop.f32.mrf.mxu0 }
  0xf0   :  { %v1120_v20 = vpop.f32.mrf.mxu1  ;;  %v1099_v25 = vpop.f32.mrf.mxu0 }
  0xf1   :  { %v1100_v31 = vadd.f32 %v1099_v25, %v1098_v23 }
  0xf2   :  { %v1121_v21 = vpop.f32.mrf.mxu1  ;;  %v1101_v28 = vpop.f32.mrf.mxu0 }
  0xf3   :  { %v506_v34 = vadd.f32 %v1100_v31, %v995_v32  ;;  %v1122_v35 = vadd.f32 %v1121_v21, %v1120_v20 }
  0xf4   :  { %v1123_v22 = vpop.f32.mrf.mxu1  ;;  %v1102_v33 = vpop.f32.mrf.mxu0 }
  0xf5   :  { %v1103_v36 = vadd.f32 %v1102_v33, %v1101_v28  ;;  %v547_v39 = vadd.f32 %v1122_v35, %v506_v34 }
  0xf6   :  { %v1124_v24 = vpop.f32.mrf.mxu1 }
  0xf7   :  { %v509_v40 = vadd.f32 %v1103_v36, %v995_v32  ;;  %v1125_v41 = vadd.f32 %v1124_v24, %v1123_v22  ;;  %v1064_v22 = vld [vmem:[%s1571_s8] ss:$0 sm:$0xff] }
  0xf8   :  { %v628_v26 = vpop.f32.mrf.mxu1 }
  0xf9   :  { %v550_v47 = vadd.f32 %v1125_v41, %v509_v40 }
  0xfa   :  { %v1181_v27 = vpop.f32.mrf.mxu1 }
  0xfc   :  { %v631_v29 = vpop.f32.mrf.mxu1 }
  0xfe   :  { %v1182_v30 = vpop.f32.mrf.mxu1 }
 0x10e   :  { %v1142_v37 = vpop.f32.mrf.mxu0 }
 0x110   :  { %v1143_v38 = vpop.f32.mrf.mxu0 }
 0x111   :  { %v1144_v42 = vadd.f32 %v1143_v38, %v1142_v37 }
 0x112   :  { %v1145_v44 = vpop.f32.mrf.mxu0 }
 0x113   :  { %v588_v45 = vadd.f32 %v1144_v42, %v547_v39 }
 0x114   :  { %v1146_v46 = vpop.f32.mrf.mxu0 }
 0x115   :  { %v1147_v48 = vadd.f32 %v1146_v46, %v1145_v44  ;;  %v629_v49 = vadd.f32 %v628_v26, %v588_v45 }
 0x117   :  { %v591_v50 = vadd.f32 %v1147_v48, %v550_v47  ;;  %v635_v52 = vmax.f32 %v629_v49, 0.0 }
 0x119   :  { %v632_v51 = vadd.f32 %v631_v29, %v591_v50 }
 0x11b   :  { %v636_v53 = vmax.f32 %v632_v51, 0.0 }
 0x11d   :  { %v637_v54 = vpack.c.bf16 %v636_v53, %v635_v52 }
 0x11f   :  { %1200 = vmatmul.mubr.bf16.vlgmr.msra.gmra.mxu1 %v637_v54 }
 0x120   :  { %1239 = vmatprep.mubr.msk.bf16.mxu1 %vm1347_vm0, %v1346_v43  ;;  %1224 = vmatpush3.bf16.msra.mxu1 %v1313_v58 }
 0x121   :  { %1225 = vmatprep.subr.bf16.mxu1 %v1346_v43 }
 0x124   :  { %1226 = vmatpush3.bf16.msra.mxu1 %v1314_v59 }
 0x125   :  { %1227 = vmatprep.subr.bf16.mxu1 %v1346_v43 }
 0x128   :  { %1228 = vmatpush3.bf16.msra.mxu1 %v1315_v60 }
 0x129   :  { %1229 = vmatprep.subr.bf16.mxu1 %v1346_v43 }
 0x12c   :  { %1230 = vmatpush3.bf16.msra.mxu1 %v1316_v61 }
 0x12d   :  { %1231 = vmatprep.subr.bf16.mxu1 %v1346_v43 }
 0x130   :  { %1232 = vmatpush3.bf16.msra.mxu1 %v1317_v62 }
 0x131   :  { %1233 = vmatprep.subr.bf16.mxu1 %v1346_v43 }
 0x134   :  { %1234 = vmatpush3.bf16.msra.mxu1 %v1318_v9 }
 0x135   :  { %1235 = vmatprep.subr.bf16.mxu1 %v1346_v43 }
 0x138   :  { %1236 = vmatpush3.bf16.msra.mxu1 %v1319_v10 }
 0x139   :  { %1237 = vmatprep.subr.bf16.mxu1 %v1346_v43 }
 0x13c   :  { %1238 = vmatpush3.bf16.msra.mxu1 %v1320_v11 }
 0x1df   :  { %v743_v0 = vpop.f32.mrf.mxu1 }
 0x1e0   :  { %v744_v2 = vadd.f32 %v1046_v63, %v743_v0 }
 0x1e1   :  { %v1201_v1 = vpop.f32.mrf.mxu1 }
 0x1e2   :  { %v750_v6 = vmax.f32 %v744_v2, 0.0 }
 0x1e3   :  { %v746_v3 = vpop.f32.mrf.mxu1 }
 0x1e4   :  { %v747_v4 = vadd.f32 %v1046_v63, %v746_v3 }
 0x1e5   :  { %v1202_v5 = vpop.f32.mrf.mxu1 }
 0x1e6   :  { %v751_v7 = vmax.f32 %v747_v4, 0.0 }
 0x1e8   :  { %v752_v8 = vpack.c.bf16 %v751_v7, %v750_v6 }
 0x1ea   :  { %1220 = vmatmul.mubr.bf16.vlgmr.msra.gmra.mxu0 %v752_v8 }
 0x2aa   :  { %v858_v13 = vpop.f32.mrf.mxu0 }
 0x2ab   :  { %v859_v15 = vadd.f32 %v1055_v12, %v858_v13 }
 0x2ac   :  { %v1221_v14 = vpop.f32.mrf.mxu0 }
 0x2ad   :  { %v865_v19 = vmax.f32 %v859_v15, 0.0 }
 0x2ae   :  { %v861_v16 = vpop.f32.mrf.mxu0 }
 0x2af   :  { %v862_v17 = vadd.f32 %v1055_v12, %v861_v16 }
 0x2b0   :  { %v1222_v18 = vpop.f32.mrf.mxu0 }
 0x2b1   :  { %v866_v20 = vmax.f32 %v862_v17, 0.0 }
 0x2b3   :  { %v867_v21 = vpack.c.bf16 %v866_v20, %v865_v19 }
 0x2b5   :  { %1240 = vmatmul.mubr.bf16.vlgmr.msra.gmra.mxu1 %v867_v21 }
 0x375   :  { %v973_v43 = vpop.f32.mrf.mxu1 }
 0x376   :  { %v974_v25 = vadd.f32 %v1064_v22, %v973_v43 }
 0x377   :  { %v1241_v23 = vpop.f32.mrf.mxu1 }
 0x379   :  { %v976_v24 = vpop.f32.mrf.mxu1 }
 0x37a   :  { %v977_v26 = vadd.f32 %v1064_v22, %v976_v24 }
 0x37b   :  { %v1242_v27 = vpop.f32.mrf.mxu1 }
 0x37c   :  { %v1080_v28 = vpack.c.bf16 %v977_v26, %v974_v25 }
 0x37e   :  { %1081 = vst [vmem:[%s1572_s9] sm:$0xff] %v1080_v28  }
 0x37f   :  { %994 = vsyncpa [#allocation3], 1 }

</bundles_post_ra>
